<compile_context>
chip_gen: v7x
topology: tpu7x:2x2x1
jax: 0.10.0
libtpu: 0.0.40
codegen_flags: <defaults>
</compile_context>

<pallas_src>
import functools

import jax
import jax.numpy as jnp
from jax.experimental import pallas as pl
from jax.experimental.pallas import tpu as pltpu


def _round_up(x, m):
    return (x + m - 1) // m * m


def _hash32(x):
    # lowbias32 finalizer: well-mixed 32-bit hash using only xor/shift/mul.
    x = x ^ (x >> 16)
    x = x * jnp.uint32(0x7FEB352D)
    x = x ^ (x >> 15)
    x = x * jnp.uint32(0x846CA68B)
    x = x ^ (x >> 16)
    return x


def ffn_kernel(seed_ref, x_ref, w1_ref, b1_ref, w2_ref, b2_ref, o_ref, acc_ref,
               *, tk, p_dropout, training, compute_dtype):
    # All grid / SMEM scalar reads at the kernel top level (no program_id
    # inside pl.when bodies -- that was the interpret-mode crash).
    i = pl.program_id(0)
    k = pl.program_id(1)
    nk = pl.num_programs(1)
    seed_u = seed_ref[0].astype(jnp.uint32)

    @pl.when(k == 0)
    def _():
        acc_ref[...] = jnp.zeros_like(acc_ref)

    # Linear 1 on this hidden chunk (bf16 MXU, f32 accum) + bias + ReLU in f32,
    # then accumulate through Linear 2 (bf16 MXU) into the f32 scratch.
    xv = x_ref[...].astype(compute_dtype)
    h = jnp.dot(xv, w1_ref[...], preferred_element_type=jnp.float32)
    b1_chunk = b1_ref[:, pl.ds(k * tk, tk)]          # b1 fully resident in VMEM
    h = jnp.maximum(h + b1_chunk, 0.0)
    acc_ref[...] += jnp.dot(h.astype(compute_dtype), w2_ref[...],
                            preferred_element_type=jnp.float32)

    @pl.when(k == nk - 1)
    def _():
        y = acc_ref[...] + b2_ref[...]
        if training and p_dropout >= 1.0:
            y = jnp.zeros_like(y)
        elif training and p_dropout > 0.0:
            rows, cols = y.shape
            # Stateless counter-based PRNG (interpret-safe, pure VPU int ops):
            # tile-local element id hashed with a per-(seed, row-tile) salt,
            # then an integer-threshold keep test. No int32 overflow: the tile
            # index is folded into the salt, not the linear id.
            row_ids = jax.lax.broadcasted_iota(jnp.int32, y.shape, 0).astype(jnp.uint32)
            col_ids = jax.lax.broadcasted_iota(jnp.int32, y.shape, 1).astype(jnp.uint32)
            gid = row_ids * jnp.uint32(cols) + col_ids
            tile_salt = _hash32(seed_u ^ (i.astype(jnp.uint32)
                                          * jnp.uint32(0x9E3779B9)))
            bits = _hash32(gid ^ tile_salt)
            thr = jnp.uint32(min(int(p_dropout * (1 << 32)), (1 << 32) - 1))
            keep = bits >= thr
            y = jnp.where(keep, y * (1.0 / (1.0 - p_dropout)), 0.0)
        o_ref[...] = y.astype(o_ref.dtype)


def prepare_params(params, *, compute_dtype=jnp.bfloat16, tk=512):
    """Pad + cast weights ONCE, outside the hot path.

    Weights are stored transposed w.r.t. torch ((in, out)), padded to
    lane/MXU-friendly shapes, and cast to the matmul compute dtype (bf16 by
    default). Padding is exact math: padded hidden units / output features
    compute to exactly 0 and are sliced off.
    """
    w1, b1, w2, b2 = params
    D, H = w1.shape
    assert w2.shape == (H, D)
    b1 = b1.reshape(1, H)
    b2 = b2.reshape(1, D)

    Dp = _round_up(D, 128)
    # Pick the hidden chunk first (MXU-friendly), then pad H up to a multiple
    # of it (instead of shrinking tk down until it divides H).
    tk = max(128, _round_up(min(int(tk), _round_up(H, 128)), 128))
    Hp = _round_up(H, tk)

    w1p = jnp.pad(w1, ((0, Dp - D), (0, Hp - H))).astype(compute_dtype)
    b1p = jnp.pad(b1, ((0, 0), (0, Hp - H))).astype(jnp.float32)
    w2p = jnp.pad(w2, ((0, Hp - H), (0, Dp - D))).astype(compute_dtype)
    b2p = jnp.pad(b2, ((0, 0), (0, Dp - D))).astype(jnp.float32)
    return dict(w1=w1p, b1=b1p, w2=w2p, b2=b2p, D=D, H=H, Dp=Dp, Hp=Hp,
                tk=tk, compute_dtype=compute_dtype)


def feed_forward(x, prepared, *, p_dropout=0.0, training=False, seed=0, tm=512):
    """Apply the FeedForward block to x (..., instance_size)."""
    D, Dp, Hp, tk = prepared["D"], prepared["Dp"], prepared["Hp"], prepared["tk"]
    cdt = prepared["compute_dtype"]
    orig_shape = x.shape
    assert orig_shape[-1] == D

    x2 = x.reshape(-1, D)
    N = x2.shape[0]

    # ---- Row tiling: balanced tiles, small dead-row padding, >=2 tiles when
    # the problem is large enough so the "parallel" axis shards across v7x's
    # two TensorCores.
    n8 = _round_up(N, 8)
    tm = max(8, min(int(tm), n8))
    num_tiles = -(-n8 // tm)
    if num_tiles == 1 and n8 >= 256:
        num_tiles = 2
    tm = _round_up(-(-n8 // num_tiles), 8)

    # ---- Per-generation VMEM budget (v7x: 64 MiB, v5e/v6e: 128 MiB). Keep
    # headroom for compiler scratch; shrink tm until the working set fits.
    try:
        vmem_cap = int(pltpu.get_tpu_info().vmem_capacity_bytes)
    except Exception:
        vmem_cap = 64 << 20            # conservative (v7x-sized) fallback
    vmem_cap -= 12 << 20               # headroom

    adt = jnp.dtype(x.dtype).itemsize
    wdt = jnp.dtype(cdt).itemsize

    def working_set(tm_):
        return (2 * tm_ * Dp * adt         # x tile (double buffered)
                + 2 * Dp * tk * wdt        # W1 chunk
                + 2 * tk * Dp * wdt        # W2 chunk
                + 2 * Hp * 4 + 2 * Dp * 4  # biases (resident, f32)
                + 2 * tm_ * Dp * adt       # out tile
                + tm_ * Dp * 4             # f32 accumulator scratch
                + tm_ * tk * 4)            # live hidden chunk

    while working_set(tm) > vmem_cap and tm > 8:
        tm = max(8, _round_up(tm // 2, 8))

    Np = _round_up(n8, tm)
    num_tiles = Np // tm

    xp = x2
    if (Np, Dp) != (N, D):
        xp = jnp.pad(x2, ((0, Np - N), (0, Dp - D)))

    vmem_limit = int(min(max(int(working_set(tm) * 1.2), 32 << 20), vmem_cap))

    kernel = functools.partial(ffn_kernel, tk=tk, p_dropout=float(p_dropout),
                               training=bool(training), compute_dtype=cdt)
    seed_arr = jnp.array([seed], dtype=jnp.int32)

    out = pl.pallas_call(
        kernel,
        out_shape=jax.ShapeDtypeStruct((Np, Dp), x.dtype),
        grid_spec=pltpu.PrefetchScalarGridSpec(
            num_scalar_prefetch=1,            # dropout seed lives in SMEM
            grid=(num_tiles, Hp // tk),
            in_specs=[
                pl.BlockSpec((tm, Dp), lambda i, k, s: (i, 0)),   # x tile
                pl.BlockSpec((Dp, tk), lambda i, k, s: (0, k)),   # W1 chunk
                pl.BlockSpec((1, Hp), lambda i, k, s: (0, 0)),    # b1 resident
                pl.BlockSpec((tk, Dp), lambda i, k, s: (k, 0)),   # W2 chunk
                pl.BlockSpec((1, Dp), lambda i, k, s: (0, 0)),    # b2 resident
            ],
            out_specs=pl.BlockSpec((tm, Dp), lambda i, k, s: (i, 0)),
            scratch_shapes=[pltpu.VMEM((tm, Dp), jnp.float32)],
        ),
        compiler_params=pltpu.CompilerParams(
            dimension_semantics=("parallel", "arbitrary"),
            vmem_limit_bytes=vmem_limit),
    )(seed_arr, xp, prepared["w1"], prepared["b1"], prepared["w2"], prepared["b2"])
    return out[:N, :D].reshape(orig_shape)


def init_params(key, instance_size, dtype=jnp.float32):
    """Deterministic init mimicking torch.nn.Linear default U[-1/sqrt(fan_in), +]."""
    D, H = instance_size, 4 * instance_size
    k1, k2, k3, k4 = jax.random.split(key, 4)
    bound1 = 1.0 / (D ** 0.5)
    bound2 = 1.0 / (H ** 0.5)
    w1 = jax.random.uniform(k1, (D, H), dtype, -bound1, bound1)   # (in, out)
    b1 = jax.random.uniform(k2, (1, H), dtype, -bound1, bound1)
    w2 = jax.random.uniform(k3, (H, D), dtype, -bound2, bound2)
    b2 = jax.random.uniform(k4, (1, D), dtype, -bound2, bound2)
    return w1, b1, w2, b2


def feed_forward_ref(x, params):
    """Pure-JAX f32 reference (eval mode: dropout is identity)."""
    w1, b1, w2, b2 = params
    h = jnp.maximum(x @ w1 + b1[0], 0.0)
    return h @ w2 + b2[0]


if __name__ == "__main__":
    instance_size = 32       # -> hidden = 128
    batch, seq = 2, 8
    p_dropout = 0.1

    key = jax.random.PRNGKey(0)
    kx, kp = jax.random.split(key)
    x = jax.random.normal(kx, (batch, seq, instance_size), jnp.float32)
    params = init_params(kp, instance_size)
    prep = prepare_params(params, compute_dtype=jnp.bfloat16)

    # Eval-mode forward (dropout is identity, matching model.eval()).
    out = jax.block_until_ready(
        feed_forward(x, prep, p_dropout=p_dropout, training=False))
    ref = feed_forward_ref(x, params)
    assert out.shape == x.shape
    # bf16 MXU inputs with f32 accumulation vs. the f32 reference.
    assert jnp.allclose(out, ref, atol=5e-2, rtol=5e-2), "mismatch vs reference"

    # Training-mode forward exercises the in-kernel dropout path.
    out_train = jax.block_until_ready(
        feed_forward(x, prep, p_dropout=p_dropout, training=True, seed=123))
    assert out_train.shape == x.shape
    assert bool(jnp.all(jnp.isfinite(out_train)))
    # Kept (non-zero) elements must equal the eval kernel output * 1/(1-p):
    # both paths share the same f32 accumulator, so this is exact.
    kept = out_train != 0
    scaled = out / (1.0 - p_dropout)
    assert jnp.allclose(jnp.where(kept, out_train, 0.0),
                        jnp.where(kept, scaled, 0.0),
                        atol=1e-5, rtol=1e-5), "dropout scaling mismatch"
    drop_frac = 1.0 - float(jnp.mean(kept.astype(jnp.float32)))
    assert drop_frac < 0.5, "dropout rate implausibly high"

    print("KERNEL_OK")
</pallas_src>

<mosaic_0001>
module attributes {stable_mosaic.version = 11 : i64} {
  func.func @ffn_kernel(%arg0: i32, %arg1: i32, %arg2: memref<1xi32, #tpu.memory_space<smem>>, %arg3: memref<16x128xf32, #tpu.memory_space<vmem>>, %arg4: memref<128x128xbf16, #tpu.memory_space<vmem>>, %arg5: memref<1x128xf32, #tpu.memory_space<vmem>>, %arg6: memref<128x128xbf16, #tpu.memory_space<vmem>>, %arg7: memref<1x128xf32, #tpu.memory_space<vmem>>, %arg8: memref<16x128xf32, #tpu.memory_space<vmem>>, %arg9: memref<16x128xf32, #tpu.memory_space<vmem>>) attributes {dimension_semantics = [#tpu.dimension_semantics<parallel>, #tpu.dimension_semantics<arbitrary>], iteration_bounds = array<i64: 1, 1>, scalar_prefetch = 1 : i64, scratch_operands = 1 : i64, tpu.core_type = #tpu.core_type<tc>, window_params = [{transform_indices = @transform_0, window_bounds = array<i64: 16, 128>}, {transform_indices = @transform_1, window_bounds = array<i64: 128, 128>}, {pipeline_mode = #tpu.pipeline_mode<synchronous>, transform_indices = @transform_2, window_bounds = array<i64: 1, 128>}, {transform_indices = @transform_3, window_bounds = array<i64: 128, 128>}, {pipeline_mode = #tpu.pipeline_mode<synchronous>, transform_indices = @transform_4, window_bounds = array<i64: 1, 128>}, {transform_indices = @transform_5, window_bounds = array<i64: 16, 128>}]} {
    %c0_i32 = arith.constant 0 : i32
    %0 = arith.cmpi eq, %arg1, %c0_i32 : i32
    %1 = arith.extui %0 : i1 to i32
    %c0_i32_0 = arith.constant 0 : i32
    %2 = arith.cmpi ne, %1, %c0_i32_0 : i32
    scf.if %2 {
      %cst_15 = arith.constant 0.000000e+00 : f32
      %23 = vector.broadcast %cst_15 : f32 to vector<16x128xf32>
      %c0_16 = arith.constant 0 : index
      %c0_17 = arith.constant 0 : index
      %24 = vector.load %arg9[%c0_16, %c0_17] : memref<16x128xf32, #tpu.memory_space<vmem>>, vector<16x128xf32>
      tpu.vector_store %arg9[%c0_16, %c0_17], %23 {strides = array<i32>} : memref<16x128xf32, #tpu.memory_space<vmem>>, vector<16x128xf32>,
    } else {
    }
    %c0 = arith.constant 0 : index
    %c0_1 = arith.constant 0 : index
    %3 = vector.load %arg3[%c0, %c0_1] : memref<16x128xf32, #tpu.memory_space<vmem>>, vector<16x128xf32>
    %4 = arith.truncf %3 : vector<16x128xf32> to vector<16x128xbf16>
    %c0_2 = arith.constant 0 : index
    %c0_3 = arith.constant 0 : index
    %5 = vector.load %arg4[%c0_2, %c0_3] : memref<128x128xbf16, #tpu.memory_space<vmem>>, vector<128x128xbf16>
    %cst = arith.constant dense<0.000000e+00> : vector<16x128xf32>
    %6 = tpu.matmul %4, %5, %cst {dimension_numbers = #tpu.dot_dimension_numbers<[1], [0], [0], [1], [0, 0, 1, 1], [], []>} : vector<16x128xbf16>, vector<128x128xbf16>, vector<16x128xf32> -> vector<16x128xf32>
    %c128_i32 = arith.constant 128 : i32
    %7 = arith.muli %arg1, %c128_i32 : i32
    %c0_4 = arith.constant 0 : index
    %8 = arith.index_cast %7 : i32 to index
    %9 = vector.load %arg5[%c0_4, %8] : memref<1x128xf32, #tpu.memory_space<vmem>>, vector<1x128xf32>
    %10 = vector.broadcast %9 : vector<1x128xf32> to vector<16x128xf32>
    %11 = arith.addf %6, %10 : vector<16x128xf32>
    %cst_5 = arith.constant 0.000000e+00 : f32
    %12 = vector.broadcast %cst_5 : f32 to vector<16x128xf32>
    %13 = arith.maximumf %11, %12 : vector<16x128xf32>
    %c0_6 = arith.constant 0 : index
    %c0_7 = arith.constant 0 : index
    %14 = vector.load %arg9[%c0_6, %c0_7] : memref<16x128xf32, #tpu.memory_space<vmem>>, vector<16x128xf32>
    %15 = arith.truncf %13 : vector<16x128xf32> to vector<16x128xbf16>
    %c0_8 = arith.constant 0 : index
    %c0_9 = arith.constant 0 : index
    %16 = vector.load %arg6[%c0_8, %c0_9] : memref<128x128xbf16, #tpu.memory_space<vmem>>, vector<128x128xbf16>
    %cst_10 = arith.constant dense<0.000000e+00> : vector<16x128xf32>
    %17 = tpu.matmul %15, %16, %cst_10 {dimension_numbers = #tpu.dot_dimension_numbers<[1], [0], [0], [1], [0, 0, 1, 1], [], []>} : vector<16x128xbf16>, vector<128x128xbf16>, vector<16x128xf32> -> vector<16x128xf32>
    %18 = arith.addf %14, %17 : vector<16x128xf32>
    %c0_11 = arith.constant 0 : index
    %c0_12 = arith.constant 0 : index
    %19 = vector.load %arg9[%c0_11, %c0_12] : memref<16x128xf32, #tpu.memory_space<vmem>>, vector<16x128xf32>
    tpu.vector_store %arg9[%c0_11, %c0_12], %18 {strides = array<i32>} : memref<16x128xf32, #tpu.memory_space<vmem>>, vector<16x128xf32>,
    %c0_i32_13 = arith.constant 0 : i32
    %20 = arith.cmpi eq, %arg1, %c0_i32_13 : i32
    %21 = arith.extui %20 : i1 to i32
    %c0_i32_14 = arith.constant 0 : i32
    %22 = arith.cmpi ne, %21, %c0_i32_14 : i32
    scf.if %22 {
      %c0_15 = arith.constant 0 : index
      %c0_16 = arith.constant 0 : index
      %23 = vector.load %arg9[%c0_15, %c0_16] : memref<16x128xf32, #tpu.memory_space<vmem>>, vector<16x128xf32>
      %c0_17 = arith.constant 0 : index
      %c0_18 = arith.constant 0 : index
      %24 = vector.load %arg7[%c0_17, %c0_18] : memref<1x128xf32, #tpu.memory_space<vmem>>, vector<1x128xf32>
      %25 = vector.broadcast %24 : vector<1x128xf32> to vector<16x128xf32>
      %26 = arith.addf %23, %25 : vector<16x128xf32>
      %c0_19 = arith.constant 0 : index
      %c0_20 = arith.constant 0 : index
      %27 = vector.load %arg8[%c0_19, %c0_20] : memref<16x128xf32, #tpu.memory_space<vmem>>, vector<16x128xf32>
      tpu.vector_store %arg8[%c0_19, %c0_20], %26 {strides = array<i32>} : memref<16x128xf32, #tpu.memory_space<vmem>>, vector<16x128xf32>,
    } else {
    }
    return
  }
  func.func @transform_0(%arg0: i32, %arg1: i32, %arg2: memref<1xi32, #tpu.memory_space<smem>>) -> (i32, i32) {
    %c0_i32 = arith.constant 0 : i32
    %c0_i32_0 = arith.constant 0 : i32
    return %arg0, %c0_i32 : i32, i32
  }
  func.func @transform_1(%arg0: i32, %arg1: i32, %arg2: memref<1xi32, #tpu.memory_space<smem>>) -> (i32, i32) {
    %c0_i32 = arith.constant 0 : i32
    %c0_i32_0 = arith.constant 0 : i32
    return %c0_i32, %arg1 : i32, i32
  }
  func.func @transform_2(%arg0: i32, %arg1: i32, %arg2: memref<1xi32, #tpu.memory_space<smem>>) -> (i32, i32) {
    %c0_i32 = arith.constant 0 : i32
    %c0_i32_0 = arith.constant 0 : i32
    %c0_i32_1 = arith.constant 0 : i32
    return %c0_i32, %c0_i32_0 : i32, i32
  }
  func.func @transform_3(%arg0: i32, %arg1: i32, %arg2: memref<1xi32, #tpu.memory_space<smem>>) -> (i32, i32) {
    %c0_i32 = arith.constant 0 : i32
    %c0_i32_0 = arith.constant 0 : i32
    return %arg1, %c0_i32 : i32, i32
  }
  func.func @transform_4(%arg0: i32, %arg1: i32, %arg2: memref<1xi32, #tpu.memory_space<smem>>) -> (i32, i32) {
    %c0_i32 = arith.constant 0 : i32
    %c0_i32_0 = arith.constant 0 : i32
    %c0_i32_1 = arith.constant 0 : i32
    return %c0_i32, %c0_i32_0 : i32, i32
  }
  func.func @transform_5(%arg0: i32, %arg1: i32, %arg2: memref<1xi32, #tpu.memory_space<smem>>) -> (i32, i32) {
    %c0_i32 = arith.constant 0 : i32
    %c0_i32_0 = arith.constant 0 : i32
    return %arg0, %c0_i32 : i32, i32
  }
}

</mosaic_0001>

<bundles_post_ra>
// kernel: tpu_custom_call.1
= control target key start
LH: loop header
LB: loop body
LE: loop exit
PB: predicated region body
PF: predicated region fallthrough
CT: control target
= control target key end

     0   :  { %12 = vsyncpa [#allocation6], 0  ;;  %s646_s0 = inlined_call_operand.<no memory space> [shape: s32[1], index: 0, kind: input, shape index: {}]   ;;  %s647_s1 = inlined_call_operand.hbm [shape: f32[16,128], index: 1, kind: input, shape index: {}]   ;;  %s648_s2 = inlined_call_operand.hbm [shape: bf16[128,128], index: 2, kind: input, shape index: {}]   ;;  %s649_s3 = inlined_call_operand.vmem [shape: f32[1,128], index: 3, kind: input, shape index: {}]   ;;  %s650_s4 = inlined_call_operand.hbm [shape: bf16[128,128], index: 4, kind: input, shape index: {}]   ;;  %s651_s5 = inlined_call_operand.vmem [shape: f32[1,128], index: 5, kind: input, shape index: {}]   ;;  %s652_s6 = inlined_call_operand.hbm [shape: f32[16,128], index: 6, kind: output, shape index: {}]  }
   0x1   :  { %13 = vsyncpa [#allocation9], 0 }
   0x2   :  { %14 = vsyncpa [#allocation7], 0  ;;  %s535_s0 = smov [#allocation8]   ;;  %s441_s24 = scalar_lea.hbm %s648_s2, 1024 }
   0x3   :  { %s32_s21 = sshll.u32 %s535_s0, 4  ;;  %p442_p0 = scmp.ne.s32.totalorder %s648_s2, %s441_s24  ;;  %s33_s21 = int_to_ptr.vmem [resolvable:$true] %s32_s21 }
   0x4   :  { %p445_p1 = scmp.lt.u32.totalorder %s441_s24, %s648_s2 }
   0x6   :  { %p447_p2 = pnand %p445_p1, %p442_p0 }
   0x8   :  { %450 = shalt.err (!%p447_p2)
}
   0x9   :  { %s451_s29 = scalar_lea.vmem %s33_s21, 1024  ;;  %p456_p4 = scmp.lt.s32.totalorder %s33_s21, %s33_s21 }
   0xa   :  { %p452_p3 = scmp.ne.s32.totalorder %s33_s21, %s451_s29  ;;  %p457_p5 = scmp.lt.s32.totalorder %s451_s29, %s451_s29 }
   0xc   :  { %p458_p6 = por %p457_p5, %p456_p4 }
   0xe   :  { %p459_p7 = pnand %p458_p6, %p452_p3 }
  0x10   :  { %462 = shalt.err (!%p459_p7)
}
  0x11   :  { %s536_s30 = smov 64   ;;  %s537_s7 = smov 4  }
  0x12   :  { %38 = dma.hbm_to_vmem [thread:$0]  %s648_s2, 1024, %s33_s21, [#allocation9], %s536_s30, %s536_s30, %s537_s7  }
  0x13   :  { %s538_s10 = smov [#allocation5]   ;;  %s463_s14 = scalar_lea.hbm %s647_s1, 256 }
  0x14   :  { %s20_s11 = sshll.u32 %s538_s10, 4  ;;  %p464_p8 = scmp.ne.s32.totalorder %s647_s1, %s463_s14  ;;  %s21_s11 = int_to_ptr.vmem [resolvable:$true] %s20_s11 }
  0x15   :  { %p467_p9 = scmp.lt.u32.totalorder %s463_s14, %s647_s1 }
  0x17   :  { %p469_p10 = pnand %p467_p9, %p464_p8 }
  0x19   :  { %472 = shalt.err (!%p469_p10)
}
  0x1a   :  { %s473_s19 = scalar_lea.vmem %s21_s11, 256  ;;  %p478_p12 = scmp.lt.s32.totalorder %s21_s11, %s21_s11 }
  0x1b   :  { %p474_p11 = scmp.ne.s32.totalorder %s21_s11, %s473_s19  ;;  %p479_p13 = scmp.lt.s32.totalorder %s473_s19, %s473_s19 }
  0x1d   :  { %p480_p0 = por %p479_p13, %p478_p12 }
  0x1f   :  { %p481_p1 = pnand %p480_p0, %p474_p11 }
  0x21   :  { %484 = shalt.err (!%p481_p1)
}
  0x22   :  { %s539_s2 = smov 128   ;;  %s540_s20 = smov 8  }
  0x23   :  { %26 = dma.hbm_to_vmem [thread:$0]  %s647_s1, 256, %s21_s11, [#allocation6], %s539_s2, %s539_s2, %s540_s20  }
  0x24   :  { %s541_s22 = smov [#allocation10]   ;;  %s485_s26 = scalar_lea.hbm %s650_s4, 1024 }
  0x25   :  { %s46_s23 = sshll.u32 %s541_s22, 4  ;;  %p486_p2 = scmp.ne.s32.totalorder %s650_s4, %s485_s26  ;;  %s47_s23 = int_to_ptr.vmem [resolvable:$true] %s46_s23 }
  0x26   :  { %p489_p3 = scmp.lt.u32.totalorder %s485_s26, %s650_s4 }
  0x28   :  { %p491_p4 = pnand %p489_p3, %p486_p2 }
  0x2a   :  { %494 = shalt.err (!%p491_p4)
}
  0x2b   :  { %s495_s9 = scalar_lea.vmem %s47_s23, 1024  ;;  %p500_p6 = scmp.lt.s32.totalorder %s47_s23, %s47_s23 }
  0x2c   :  { %p496_p5 = scmp.ne.s32.totalorder %s47_s23, %s495_s9  ;;  %p501_p7 = scmp.lt.s32.totalorder %s495_s9, %s495_s9 }
  0x2e   :  { %p502_p8 = por %p501_p7, %p500_p6 }
  0x30   :  { %p503_p9 = pnand %p502_p8, %p496_p5 }
  0x32   :  { %506 = shalt.err (!%p503_p9)
}
  0x33   :  { %52 = dma.hbm_to_vmem [thread:$0]  %s650_s4, 1024, %s47_s23, [#allocation9], %s536_s30, %s536_s30, %s537_s7  }
  0x34   :  { %529 = dma.done.wait [#allocation6], 256  }
  0x35   :  { %530 = vsyncadd [#allocation6], 4294967040 }
  0x36   :  { %531 = dma.done.wait [#allocation9], 2048  }
  0x37   :  { %532 = vsyncadd [#allocation9], 4294965248  ;;  %v542_v0 = vmov 0.0   ;;  %vm543_vm0 = vmmov 0   ;;  %v425_v1 = vld [vmem:[#allocation8] sm:$0xff]   ;;  %v426_v2 = vld [vmem:[#allocation8 + $0x8] sm:$0xff]  }
  0x38   :  { %375 = vmatprep.subr.bf16.mxu0 %v542_v0  ;;  %391 = vmatprep.mubr.msk.bf16.mxu0 %vm543_vm0, %v542_v0  ;;  %v427_v3 = vld [vmem:[#allocation8 + $0x10] sm:$0xff]   ;;  %v433_v4 = vld [vmem:[#allocation10] sm:$0xff]   ;;  %v428_v5 = vld [vmem:[#allocation8 + $0x18] sm:$0xff]   ;;  %s544_s12 = smov [#allocation11]  }
  0x39   :  { %395 = vmatprep.subr.bf16.mxu1 %v542_v0  ;;  %411 = vmatprep.mubr.msk.bf16.mxu1 %vm543_vm0, %v542_v0  ;;  %v434_v6 = vld [vmem:[#allocation10 + $0x8] sm:$0xff]   ;;  %v429_v7 = vld [vmem:[#allocation8 + $0x20] sm:$0xff]   ;;  %v435_v8 = vld [vmem:[#allocation10 + $0x10] sm:$0xff]   ;;  %s325_s13 = sshll.u32 %s544_s12, 4  ;;  %s326_s13 = int_to_ptr.vmem [resolvable:$true] %s325_s13 }
  0x3a   :  { %376 = vmatpush3.bf16.msra.mxu0 %v425_v1  ;;  %396 = vmatpush3.bf16.msra.mxu1 %v433_v4  ;;  %v430_v9 = vld [vmem:[#allocation8 + $0x28] sm:$0xff]   ;;  %v436_v10 = vld [vmem:[#allocation10 + $0x18] sm:$0xff]   ;;  %v431_v11 = vld [vmem:[#allocation8 + $0x30] sm:$0xff]   ;;  %p512_p11 = scmp.lt.s32.totalorder %s326_s13, %s326_s13 }
  0x3b   :  { %377 = vmatprep.subr.bf16.mxu0 %v542_v0  ;;  %397 = vmatprep.subr.bf16.mxu1 %v542_v0  ;;  %v437_v12 = vld [vmem:[#allocation10 + $0x20] sm:$0xff]   ;;  %v432_v13 = vld [vmem:[#allocation8 + $0x38] sm:$0xff]   ;;  %v71_v14 = vld [vmem:[#allocation5] sm:$0xff] }
  0x3c   :  { %v72_v15 = vld [vmem:[#allocation5 + $0x8] sm:$0xff]  ;;  %v438_v16 = vld [vmem:[#allocation10 + $0x28] sm:$0xff]   ;;  %v439_v18 = vld [vmem:[#allocation10 + $0x30] sm:$0xff]  }
  0x3d   :  { %v73_v17 = vpack.c.bf16 %v72_v15, %v71_v14  ;;  %v440_v19 = vld [vmem:[#allocation10 + $0x38] sm:$0xff]   ;;  %v339_v20 = vld [vmem:[%s649_s3] ss:$0 sm:$0xff]  ;;  %s507_s3 = scalar_lea.vmem %s326_s13, 256 }
  0x3e   :  { %378 = vmatpush3.bf16.msra.mxu0 %v426_v2  ;;  %398 = vmatpush3.bf16.msra.mxu1 %v434_v6  ;;  %v356_v30 = vld [vmem:[%s651_s5] ss:$0 sm:$0xff]  ;;  %p508_p10 = scmp.ne.s32.totalorder %s326_s13, %s507_s3  ;;  %p513_p12 = scmp.lt.s32.totalorder %s507_s3, %s507_s3 }
  0x3f   :  { %379 = vmatprep.subr.bf16.mxu0 %v542_v0  ;;  %399 = vmatprep.subr.bf16.mxu1 %v542_v0 }
  0x40   :  { %p514_p13 = por %p513_p12, %p512_p11 }
  0x42   :  { %380 = vmatpush3.bf16.msra.mxu0 %v427_v3  ;;  %400 = vmatpush3.bf16.msra.mxu1 %v435_v8  ;;  %p515_p0 = pnand %p514_p13, %p508_p10 }
  0x43   :  { %381 = vmatprep.subr.bf16.mxu0 %v542_v0  ;;  %401 = vmatprep.subr.bf16.mxu1 %v542_v0 }
  0x46   :  { %382 = vmatpush3.bf16.msra.mxu0 %v428_v5  ;;  %402 = vmatpush3.bf16.msra.mxu1 %v436_v10 }
  0x47   :  { %383 = vmatprep.subr.bf16.mxu0 %v542_v0  ;;  %403 = vmatprep.subr.bf16.mxu1 %v542_v0 }
  0x4a   :  { %384 = vmatpush3.bf16.msra.mxu0 %v429_v7  ;;  %404 = vmatpush3.bf16.msra.mxu1 %v437_v12 }
  0x4b   :  { %385 = vmatprep.subr.bf16.mxu0 %v542_v0  ;;  %405 = vmatprep.subr.bf16.mxu1 %v542_v0 }
  0x4e   :  { %386 = vmatpush3.bf16.msra.mxu0 %v430_v9  ;;  %406 = vmatpush3.bf16.msra.mxu1 %v438_v16 }
  0x4f   :  { %387 = vmatprep.subr.bf16.mxu0 %v542_v0  ;;  %407 = vmatprep.subr.bf16.mxu1 %v542_v0 }
  0x52   :  { %388 = vmatpush3.bf16.msra.mxu0 %v431_v11  ;;  %408 = vmatpush3.bf16.msra.mxu1 %v439_v18 }
  0x53   :  { %389 = vmatprep.subr.bf16.mxu0 %v542_v0  ;;  %409 = vmatprep.subr.bf16.mxu1 %v542_v0 }
  0x56   :  { %390 = vmatpush3.bf16.msra.mxu0 %v432_v13  ;;  %410 = vmatpush3.bf16.msra.mxu1 %v440_v19 }
  0x59   :  { %392 = vmatmul.mubr.bf16.vlgmr.msra.gmra.mrb[0].mxu0 %v73_v17 }
 0x12c   :  { %v183_v21 = vpop.f32.mrb[0].mxu0 }
 0x12d   :  { %v184_v22 = vadd.f32 %v339_v20, %v183_v21  ;;  %v393_v23 = vpop.f32.mrb[1].mxu0 }
 0x12e   :  { %v186_v24 = vpop.f32.mrb[2].mxu0 }
 0x12f   :  { %v187_v25 = vadd.f32 %v339_v20, %v186_v24  ;;  %v394_v26 = vpop.f32.mrb[3].mxu0  ;;  %v190_v27 = vmax.f32 %v184_v22, 0.0 }
 0x131   :  { %v191_v28 = vmax.f32 %v187_v25, 0.0 }
 0x133   :  { %v194_v29 = vpack.c.bf16 %v191_v28, %v190_v27 }
 0x135   :  { %412 = vmatmul.mubr.bf16.vlgmr.msra.gmra.mrb[0].mxu1 %v194_v29 }
 0x208   :  { %v293_v31 = vpop.f32.mrb[0].mxu1 }
 0x209   :  { %v316_v32 = vadd.f32 %v356_v30, %v293_v31  ;;  %v413_v33 = vpop.f32.mrb[1].mxu1 }
 0x20a   :  { %v296_v34 = vpop.f32.mrb[2].mxu1 }
 0x20b   :  { %318 = vst [vmem:[#allocation11] sm:$0xff] %v316_v32  ;;  %v317_v35 = vadd.f32 %v356_v30, %v296_v34  ;;  %v414_v36 = vpop.f32.mrb[3].mxu1 }
 0x20d   :  { %319 = vst [vmem:[#allocation11 + $0x8] sm:$0xff] %v317_v35 }
 0x20e   :  { %518 = shalt.err (!%p515_p0)
}
 0x20f   :  { %s519_s15 = scalar_lea.hbm %s652_s6, 256 }
 0x210   :  { %p520_p1 = scmp.ne.s32.totalorder %s652_s6, %s519_s15  ;;  %p523_p2 = scmp.lt.u32.totalorder %s519_s15, %s652_s6 }
 0x212   :  { %p525_p3 = pnand %p523_p2, %p520_p1 }
 0x214   :  { %528 = shalt.err (!%p525_p3)
}
 0x215   :  { %331 = dma.vmem_to_hbm [thread:$0]  %s326_s13, 256, %s652_s6, [#allocation7], %s539_s2, %s539_s2, %s540_s20  }
 0x216   :  { %533 = dma.done.wait [#allocation7], 256  }
 0x217   :  { %534 = vsyncadd [#allocation7], 4294967040 }
 0x218   :  { %335 = vsyncpa [#allocation6], 1 }
 0x219   :  { %336 = vsyncpa [#allocation9], 1 }
 0x21a   :  { %337 = vsyncpa [#allocation7], 1 }

</bundles_post_ra>
